<compile_context>
chip_gen: v6e
topology: v6e:2x2x1
jax: 0.10.0
libtpu: 0.0.40
codegen_flags: <defaults>
</compile_context>

<pallas_src>
import functools

import jax
import jax.numpy as jnp
from jax.experimental import pallas as pl
from jax.experimental.pallas import tpu as pltpu


def _round_up(x, m):
    return ((x + m - 1) // m) * m


def _choose_tile(rp, target=2048):
    """Packed-row tile: as large as possible (<= target) with <=12.5% pad waste."""
    rp8 = _round_up(rp, 8)
    if rp8 <= target:
        return rp8
    for cand in (2048, 1536, 1024, 768, 512, 384, 256, 128, 64, 32, 16, 8):
        if cand > target:
            continue
        waste = _round_up(rp, cand) - rp
        if waste * 8 <= rp:          # keep padded work <= ~12.5%
            return cand
    return 8


def ehr_kernel(e0_ref, e12_ref, dem2_ref,
               wdc_ref, bdc_ref,      # diag_comb   (block-diag, lane-packed)
               wdv_ref, bdv_ref,      # diag_visit
               wf1_ref,               # final1 (bias folded into dem2)
               out_ref, *, rows_per_batch):
    tm, _ = out_ref.shape
    nb = dem2_ref.shape[0]           # padded batch count (VMEM-resident table)

    e0 = e0_ref[...]                 # (tm, lane) bf16
    e12 = e12_ref[...]               # (tm, lane) bf16  == e1 + e2 (lane-packed)

    # r = relu(diag_comb(e0));  combo = r*e1 + r*e2 == r*(e1+e2)
    r = jnp.maximum(
        jnp.dot(e0, wdc_ref[...], preferred_element_type=jnp.float32) + bdc_ref[...],
        0.0)

    # med = relu(diag_visit(e0 + combo))
    x = e0.astype(jnp.float32) + r * e12.astype(jnp.float32)
    med = jnp.maximum(
        jnp.dot(x.astype(jnp.bfloat16), wdv_ref[...],
                preferred_element_type=jnp.float32) + bdv_ref[...],
        0.0)

    # Broadcast dem2 (per-batch row) to the tm packed rows of this tile via a
    # one-hot MXU matmul: rows of the same batch are contiguous, so
    # batch_of_row = global_row // rows_per_batch, expressed as range compares
    # (no vector integer division needed).
    row0 = pl.program_id(0) * tm
    rows = jax.lax.broadcasted_iota(jnp.int32, (tm, nb), 0) + row0
    cols = jax.lax.broadcasted_iota(jnp.int32, (tm, nb), 1)
    lo = cols * rows_per_batch
    onehot = jnp.logical_and(rows >= lo, rows < lo + rows_per_batch)
    dem2_rows = jnp.dot(onehot.astype(jnp.bfloat16), dem2_ref[...],
                        preferred_element_type=jnp.float32)     # (tm, lane) f32

    # visit = relu(final1(med) + dem2)   (b_f1 already folded into dem2)
    visit = jnp.maximum(
        jnp.dot(med.astype(jnp.bfloat16), wf1_ref[...],
                preferred_element_type=jnp.float32) + dem2_rows,
        0.0)

    out_ref[...] = visit.astype(out_ref.dtype)


def ehr_embedding(input_ids, demo, params):
    """input_ids: (B, S, 3) int32; demo: (B, D) float32 -> (B, S, A) float32."""
    B, S, _ = input_ids.shape
    emb = params["vocab_embd"]
    A = emb.shape[1]

    # Lane packing factor: pack `pack` logical rows of width A into one 128-lane row.
    if A % 128 == 0:
        pack = 1
    elif 128 % A == 0:
        pack = 128 // A
    else:
        pack = 1                      # fallback: lane=A (<128) -> still correct
    lane = A * pack

    # Keep every packed row inside a single batch: pad seq to a multiple of pack.
    S_pad = _round_up(S, pack)
    rows_per_batch = S_pad // pack
    RP = B * rows_per_batch                      # packed rows (real)

    tm = _choose_tile(RP)
    RP_pad = _round_up(RP, tm)
    R_pad = RP_pad * pack
    grid = (RP_pad // tm,)

    act_dt = jnp.bfloat16
    emb_b = emb.astype(act_dt)

    # Pad the tiny int ids FIRST (cheap) so the gathers emit padded shapes directly.
    ids = input_ids
    if S_pad != S:
        ids = jnp.pad(ids, ((0, 0), (0, S_pad - S), (0, 0)))
    ids = ids.reshape(B * S_pad, 3)
    if R_pad != B * S_pad:
        ids = jnp.pad(ids, ((0, R_pad - B * S_pad), (0, 0)))

    # Embedding lookups (glue).  Only e0 and e1+e2 are needed by the math.
    e0_p = jnp.take(emb_b, ids[:, 0], axis=0).reshape(RP_pad, lane)
    e12_p = (jnp.take(emb_b, ids[:, 1], axis=0)
             + jnp.take(emb_b, ids[:, 2], axis=0)).reshape(RP_pad, lane)

    # Demo path hoisted out of the kernel (M=B), with final1's bias folded in.
    dem = jax.nn.relu(demo @ params["w_dm"] + params["b_dm"])          # (B, A)
    dem2 = dem @ params["w_f2"] + params["b_f2"] + params["b_f1"]      # (B, A)
    B_pad = _round_up(B, 8)
    dem2 = jnp.pad(dem2, ((0, B_pad - B), (0, 0)))
    dem2_p = jnp.tile(dem2, (1, pack)).astype(act_dt)                  # (B_pad, lane)

    # Block-diagonal weights / tiled biases act independently on each packed chunk.
    eye = jnp.eye(pack, dtype=jnp.float32)

    def bd(w):                                   # (A, A) -> (lane, lane) bf16
        return jnp.kron(eye, w).astype(act_dt)

    def tb(b):                                   # (1, A) -> (1, lane) f32
        return jnp.tile(b, (1, pack)).astype(jnp.float32)

    row_spec = pl.BlockSpec((tm, lane), lambda i: (i, 0))

    def full_spec(shape):                        # whole-array, VMEM-resident block
        return pl.BlockSpec(shape, lambda i: (0, 0))

    # Row-tile axis: shard across v7x's two TensorCores; plain parallel elsewhere.
    dev_kind = jax.devices()[0].device_kind.lower()
    row_sem = pltpu.CORE_PARALLEL if "v7" in dev_kind else "parallel"

    kernel = functools.partial(ehr_kernel, rows_per_batch=rows_per_batch)

    out_p = pl.pallas_call(
        kernel,
        out_shape=jax.ShapeDtypeStruct((RP_pad, lane), jnp.float32),
        grid_spec=pltpu.PrefetchScalarGridSpec(
            num_scalar_prefetch=0,
            grid=grid,
            in_specs=[row_spec, row_spec,
                      full_spec((B_pad, lane)),          # dem2 (resident)
                      full_spec((lane, lane)), full_spec((1, lane)),   # diag_comb
                      full_spec((lane, lane)), full_spec((1, lane)),   # diag_visit
                      full_spec((lane, lane))],                        # final1
            out_specs=row_spec,
        ),
        compiler_params=pltpu.CompilerParams(
            dimension_semantics=(row_sem,),
            vmem_limit_bytes=32 * 1024 * 1024,   # headroom; fits v5e/v6e/v7x
        ),
    )(e0_p, e12_p, dem2_p,
      bd(params["w_dc"]), tb(params["b_dc"]),
      bd(params["w_dv"]), tb(params["b_dv"]),
      bd(params["w_f1"]))

    # Unpack lanes back to logical rows and strip row / seq padding.
    out = out_p.reshape(R_pad, A)[: B * S_pad].reshape(B, S_pad, A)[:, :S, :]
    return out


def init_params(key, vocab_dim, demo_dim, align_dim):
    """Deterministic synthetic init. Linear weights stored pre-transposed (in, out)."""
    ks = jax.random.split(key, 11)

    def linear(kw, kb, fan_in, fan_out):
        bound = 1.0 / jnp.sqrt(fan_in)
        w = jax.random.uniform(kw, (fan_in, fan_out), jnp.float32, -bound, bound)
        b = jax.random.uniform(kb, (1, fan_out), jnp.float32, -bound, bound)
        return w, b

    params = {}
    params["vocab_embd"] = jax.random.normal(ks[0], (vocab_dim, align_dim), jnp.float32)
    params["w_dc"], params["b_dc"] = linear(ks[1], ks[2], align_dim, align_dim)
    params["w_dv"], params["b_dv"] = linear(ks[3], ks[4], align_dim, align_dim)
    params["w_dm"], params["b_dm"] = linear(ks[5], ks[6], demo_dim, align_dim)
    params["w_f1"], params["b_f1"] = linear(ks[7], ks[8], align_dim, align_dim)
    params["w_f2"], params["b_f2"] = linear(ks[9], ks[10], align_dim, align_dim)
    return params


def ref_forward(input_ids, demo, params):
    """Pure-JAX f32 reference matching the PyTorch forward."""
    emb = params["vocab_embd"]
    e0 = emb[input_ids[:, :, 0]]
    e1 = emb[input_ids[:, :, 1]]
    e2 = emb[input_ids[:, :, 2]]
    r = jax.nn.relu(e0 @ params["w_dc"] + params["b_dc"])
    combo = r * e1 + r * e2
    med = jax.nn.relu((e0 + combo) @ params["w_dv"] + params["b_dv"])
    dem = jax.nn.relu(demo @ params["w_dm"] + params["b_dm"])
    dem2 = dem @ params["w_f2"] + params["b_f2"]
    return jax.nn.relu(med @ params["w_f1"] + params["b_f1"] + dem2[:, None, :])


if __name__ == "__main__":
    # Small shapes consistent with the module's forward.
    B, S, A = 2, 8, 32          # batch, seq (visits), align_dim
    vocab_dim, demo_dim = 16, 4

    key = jax.random.PRNGKey(0)
    k_params, k_ids, k_demo = jax.random.split(key, 3)

    params = init_params(k_params, vocab_dim, demo_dim, A)
    input_ids = jax.random.randint(k_ids, (B, S, 3), 0, vocab_dim, dtype=jnp.int32)
    demo = jax.random.normal(k_demo, (B, demo_dim), jnp.float32)
    # `mask` is unused by the PyTorch forward, so it is omitted here.

    out = jax.jit(ehr_embedding)(input_ids, demo, params)
    out = jax.block_until_ready(out)

    ref = ref_forward(input_ids, demo, params)
    assert out.shape == (B, S, A)
    # bf16 activations in the kernel -> relaxed tolerance vs the f32 reference.
    assert jnp.allclose(out, ref, rtol=5e-2, atol=5e-2), "mismatch vs reference"

    print("KERNEL_OK")
</pallas_src>

<mosaic_0001>
module attributes {stable_mosaic.version = 11 : i64} {
  func.func @ehr_kernel(%arg0: i32, %arg1: memref<8x128xbf16, #tpu.memory_space<vmem>>, %arg2: memref<8x128xbf16, #tpu.memory_space<vmem>>, %arg3: memref<8x128xbf16, #tpu.memory_space<vmem>>, %arg4: memref<128x128xbf16, #tpu.memory_space<vmem>>, %arg5: memref<1x128xf32, #tpu.memory_space<vmem>>, %arg6: memref<128x128xbf16, #tpu.memory_space<vmem>>, %arg7: memref<1x128xf32, #tpu.memory_space<vmem>>, %arg8: memref<128x128xbf16, #tpu.memory_space<vmem>>, %arg9: memref<8x128xf32, #tpu.memory_space<vmem>>) attributes {dimension_semantics = [#tpu.dimension_semantics<parallel>], iteration_bounds = array<i64: 1>, scalar_prefetch = 0 : i64, scratch_operands = 0 : i64, tpu.core_type = #tpu.core_type<tc>, window_params = [{transform_indices = @transform_0, window_bounds = array<i64: 8, 128>}, {transform_indices = @transform_1, window_bounds = array<i64: 8, 128>}, {pipeline_mode = #tpu.pipeline_mode<synchronous>, transform_indices = @transform_2, window_bounds = array<i64: 8, 128>}, {pipeline_mode = #tpu.pipeline_mode<synchronous>, transform_indices = @transform_3, window_bounds = array<i64: 128, 128>}, {pipeline_mode = #tpu.pipeline_mode<synchronous>, transform_indices = @transform_4, window_bounds = array<i64: 1, 128>}, {pipeline_mode = #tpu.pipeline_mode<synchronous>, transform_indices = @transform_5, window_bounds = array<i64: 128, 128>}, {pipeline_mode = #tpu.pipeline_mode<synchronous>, transform_indices = @transform_6, window_bounds = array<i64: 1, 128>}, {pipeline_mode = #tpu.pipeline_mode<synchronous>, transform_indices = @transform_7, window_bounds = array<i64: 128, 128>}, {transform_indices = @transform_8, window_bounds = array<i64: 8, 128>}]} {
    %c0 = arith.constant 0 : index
    %c0_0 = arith.constant 0 : index
    %0 = vector.load %arg1[%c0, %c0_0] : memref<8x128xbf16, #tpu.memory_space<vmem>>, vector<8x128xbf16>
    %c0_1 = arith.constant 0 : index
    %c0_2 = arith.constant 0 : index
    %1 = vector.load %arg2[%c0_1, %c0_2] : memref<8x128xbf16, #tpu.memory_space<vmem>>, vector<8x128xbf16>
    %c0_3 = arith.constant 0 : index
    %c0_4 = arith.constant 0 : index
    %2 = vector.load %arg4[%c0_3, %c0_4] : memref<128x128xbf16, #tpu.memory_space<vmem>>, vector<128x128xbf16>
    %cst = arith.constant dense<0.000000e+00> : vector<8x128xf32>
    %3 = tpu.matmul %0, %2, %cst {dimension_numbers = #tpu.dot_dimension_numbers<[1], [0], [0], [1], [0, 0, 1, 1], [], []>} : vector<8x128xbf16>, vector<128x128xbf16>, vector<8x128xf32> -> vector<8x128xf32>
    %c0_5 = arith.constant 0 : index
    %c0_6 = arith.constant 0 : index
    %4 = vector.load %arg5[%c0_5, %c0_6] : memref<1x128xf32, #tpu.memory_space<vmem>>, vector<1x128xf32>
    %5 = vector.broadcast %4 : vector<1x128xf32> to vector<8x128xf32>
    %6 = arith.addf %3, %5 : vector<8x128xf32>
    %cst_7 = arith.constant 0.000000e+00 : f32
    %7 = vector.broadcast %cst_7 : f32 to vector<8x128xf32>
    %8 = arith.maximumf %6, %7 : vector<8x128xf32>
    %9 = arith.extf %0 : vector<8x128xbf16> to vector<8x128xf32>
    %10 = arith.extf %1 : vector<8x128xbf16> to vector<8x128xf32>
    %11 = arith.mulf %8, %10 : vector<8x128xf32>
    %12 = arith.addf %9, %11 : vector<8x128xf32>
    %13 = arith.truncf %12 : vector<8x128xf32> to vector<8x128xbf16>
    %c0_8 = arith.constant 0 : index
    %c0_9 = arith.constant 0 : index
    %14 = vector.load %arg6[%c0_8, %c0_9] : memref<128x128xbf16, #tpu.memory_space<vmem>>, vector<128x128xbf16>
    %cst_10 = arith.constant dense<0.000000e+00> : vector<8x128xf32>
    %15 = tpu.matmul %13, %14, %cst_10 {dimension_numbers = #tpu.dot_dimension_numbers<[1], [0], [0], [1], [0, 0, 1, 1], [], []>} : vector<8x128xbf16>, vector<128x128xbf16>, vector<8x128xf32> -> vector<8x128xf32>
    %c0_11 = arith.constant 0 : index
    %c0_12 = arith.constant 0 : index
    %16 = vector.load %arg7[%c0_11, %c0_12] : memref<1x128xf32, #tpu.memory_space<vmem>>, vector<1x128xf32>
    %17 = vector.broadcast %16 : vector<1x128xf32> to vector<8x128xf32>
    %18 = arith.addf %15, %17 : vector<8x128xf32>
    %cst_13 = arith.constant 0.000000e+00 : f32
    %19 = vector.broadcast %cst_13 : f32 to vector<8x128xf32>
    %20 = arith.maximumf %18, %19 : vector<8x128xf32>
    %c8_i32 = arith.constant 8 : i32
    %21 = arith.muli %arg0, %c8_i32 : i32
    %22 = tpu.iota {dimensions = array<i32: 0>} : vector<8x8xi32>
    %23 = vector.broadcast %21 : i32 to vector<8x8xi32>
    %24 = arith.addi %22, %23 : vector<8x8xi32>
    %25 = tpu.iota {dimensions = array<i32: 1>} : vector<8x8xi32>
    %c2_i32 = arith.constant 2 : i32
    %26 = vector.broadcast %c2_i32 : i32 to vector<8x8xi32>
    %27 = arith.muli %25, %26 : vector<8x8xi32>
    %28 = arith.cmpi sge, %24, %27 : vector<8x8xi32>
    %c2_i32_14 = arith.constant 2 : i32
    %29 = vector.broadcast %c2_i32_14 : i32 to vector<8x8xi32>
    %30 = arith.addi %27, %29 : vector<8x8xi32>
    %31 = arith.cmpi slt, %24, %30 : vector<8x8xi32>
    %32 = arith.andi %28, %31 : vector<8x8xi1>
    %33 = arith.extui %32 : vector<8x8xi1> to vector<8x8xi32>
    %34 = arith.sitofp %33 : vector<8x8xi32> to vector<8x8xf32>
    %35 = arith.truncf %34 : vector<8x8xf32> to vector<8x8xbf16>
    %c0_15 = arith.constant 0 : index
    %c0_16 = arith.constant 0 : index
    %36 = vector.load %arg3[%c0_15, %c0_16] : memref<8x128xbf16, #tpu.memory_space<vmem>>, vector<8x128xbf16>
    %cst_17 = arith.constant dense<0.000000e+00> : vector<8x128xf32>
    %37 = tpu.matmul %35, %36, %cst_17 {dimension_numbers = #tpu.dot_dimension_numbers<[1], [0], [0], [1], [0, 0, 1, 1], [], []>} : vector<8x8xbf16>, vector<8x128xbf16>, vector<8x128xf32> -> vector<8x128xf32>
    %38 = arith.truncf %20 : vector<8x128xf32> to vector<8x128xbf16>
    %c0_18 = arith.constant 0 : index
    %c0_19 = arith.constant 0 : index
    %39 = vector.load %arg8[%c0_18, %c0_19] : memref<128x128xbf16, #tpu.memory_space<vmem>>, vector<128x128xbf16>
    %cst_20 = arith.constant dense<0.000000e+00> : vector<8x128xf32>
    %40 = tpu.matmul %38, %39, %cst_20 {dimension_numbers = #tpu.dot_dimension_numbers<[1], [0], [0], [1], [0, 0, 1, 1], [], []>} : vector<8x128xbf16>, vector<128x128xbf16>, vector<8x128xf32> -> vector<8x128xf32>
    %41 = arith.addf %40, %37 : vector<8x128xf32>
    %cst_21 = arith.constant 0.000000e+00 : f32
    %42 = vector.broadcast %cst_21 : f32 to vector<8x128xf32>
    %43 = arith.maximumf %41, %42 : vector<8x128xf32>
    %c0_22 = arith.constant 0 : index
    %c0_23 = arith.constant 0 : index
    %44 = vector.load %arg9[%c0_22, %c0_23] : memref<8x128xf32, #tpu.memory_space<vmem>>, vector<8x128xf32>
    tpu.vector_store %arg9[%c0_22, %c0_23], %43 {strides = array<i32>} : memref<8x128xf32, #tpu.memory_space<vmem>>, vector<8x128xf32>,
    return
  }
  func.func @transform_0(%arg0: i32) -> (i32, i32) {
    %c0_i32 = arith.constant 0 : i32
    %c0_i32_0 = arith.constant 0 : i32
    return %arg0, %c0_i32 : i32, i32
  }
  func.func @transform_1(%arg0: i32) -> (i32, i32) {
    %c0_i32 = arith.constant 0 : i32
    %c0_i32_0 = arith.constant 0 : i32
    return %arg0, %c0_i32 : i32, i32
  }
  func.func @transform_2(%arg0: i32) -> (i32, i32) {
    %c0_i32 = arith.constant 0 : i32
    %c0_i32_0 = arith.constant 0 : i32
    %c0_i32_1 = arith.constant 0 : i32
    return %c0_i32, %c0_i32_0 : i32, i32
  }
  func.func @transform_3(%arg0: i32) -> (i32, i32) {
    %c0_i32 = arith.constant 0 : i32
    %c0_i32_0 = arith.constant 0 : i32
    %c0_i32_1 = arith.constant 0 : i32
    return %c0_i32, %c0_i32_0 : i32, i32
  }
  func.func @transform_4(%arg0: i32) -> (i32, i32) {
    %c0_i32 = arith.constant 0 : i32
    %c0_i32_0 = arith.constant 0 : i32
    %c0_i32_1 = arith.constant 0 : i32
    return %c0_i32, %c0_i32_0 : i32, i32
  }
  func.func @transform_5(%arg0: i32) -> (i32, i32) {
    %c0_i32 = arith.constant 0 : i32
    %c0_i32_0 = arith.constant 0 : i32
    %c0_i32_1 = arith.constant 0 : i32
    return %c0_i32, %c0_i32_0 : i32, i32
  }
  func.func @transform_6(%arg0: i32) -> (i32, i32) {
    %c0_i32 = arith.constant 0 : i32
    %c0_i32_0 = arith.constant 0 : i32
    %c0_i32_1 = arith.constant 0 : i32
    return %c0_i32, %c0_i32_0 : i32, i32
  }
  func.func @transform_7(%arg0: i32) -> (i32, i32) {
    %c0_i32 = arith.constant 0 : i32
    %c0_i32_0 = arith.constant 0 : i32
    %c0_i32_1 = arith.constant 0 : i32
    return %c0_i32, %c0_i32_0 : i32, i32
  }
  func.func @transform_8(%arg0: i32) -> (i32, i32) {
    %c0_i32 = arith.constant 0 : i32
    %c0_i32_0 = arith.constant 0 : i32
    return %arg0, %c0_i32 : i32, i32
  }
}

</mosaic_0001>

<bundles_post_ra>
// kernel: ehr_embedding.1
= control target key start
LH: loop header
LB: loop body
LE: loop exit
PB: predicated region body
PF: predicated region fallthrough
CT: control target
= control target key end

     0   :  { %v585_v0 = vmov 0.0   ;;  %vm586_vm0 = vmmov 0   ;;  %vm281_vm1 = vcmask 1043456   ;;  %v262_v39 = vlaneseq  ;;  %s756_s3 = inlined_call_operand.vmem [shape: bf16[128,128], index: 3, kind: input, shape index: {}]   ;;  %s757_s5 = inlined_call_operand.vmem [shape: bf16[128,128], index: 5, kind: input, shape index: {}]   ;;  %s758_s0 = inlined_call_operand.vmem [shape: bf16[8,128], index: 0, kind: input, shape index: {}]   ;;  %s759_s7 = inlined_call_operand.vmem [shape: bf16[128,128], index: 7, kind: input, shape index: {}]   ;;  %s760_s2 = inlined_call_operand.vmem [shape: bf16[8,128], index: 2, kind: input, shape index: {}]   ;;  %s761_s1 = inlined_call_operand.vmem [shape: bf16[8,128], index: 1, kind: input, shape index: {}]   ;;  %s762_s4 = inlined_call_operand.vmem [shape: f32[1,128], index: 4, kind: input, shape index: {}]   ;;  %s763_s6 = inlined_call_operand.vmem [shape: f32[1,128], index: 6, kind: input, shape index: {}]   ;;  %s764_s8 = inlined_call_operand.vmem [shape: f32[8,128], index: 8, kind: output, shape index: {}]  }
   0x1   :  { %493 = vmatprep.subr.bf16.mxu0 %v585_v0  ;;  %v561_v1 = vld [vmem:[%s756_s3 + $0x38] sm:$0xff]   ;;  %509 = vmatprep.mubr.msk.bf16.mxu0 %vm586_vm0, %v585_v0  ;;  %v562_v2 = vld [vmem:[%s756_s3 + $0x30] sm:$0xff]   ;;  %v563_v3 = vld [vmem:[%s756_s3 + $0x28] sm:$0xff]   ;;  %vm277_vm5 = vcmask 64512  }
   0x2   :  { %513 = vmatprep.subr.bf16.mxu1 %v585_v0  ;;  %529 = vmatprep.mubr.msk.bf16.mxu1 %vm586_vm0, %v585_v0  ;;  %v569_v4 = vld [vmem:[%s757_s5 + $0x38] sm:$0xff]   ;;  %v564_v5 = vld [vmem:[%s756_s3 + $0x20] sm:$0xff]   ;;  %v570_v6 = vld [vmem:[%s757_s5 + $0x30] sm:$0xff]   ;;  %v267_v40 = vand.u32 127, %v262_v39  ;;  %v263_v42 = vshrl.u32 %v262_v39, 7 }
   0x3   :  { %494 = vmatpush3.bf16.msra.mxu0 %v561_v1  ;;  %514 = vmatpush3.bf16.msra.mxu1 %v569_v4  ;;  %v565_v7 = vld [vmem:[%s756_s3 + $0x18] sm:$0xff]   ;;  %v571_v8 = vld [vmem:[%s757_s5 + $0x28] sm:$0xff]   ;;  %v566_v9 = vld [vmem:[%s756_s3 + $0x10] sm:$0xff]  }
   0x4   :  { %495 = vmatprep.subr.bf16.mxu0 %v585_v0  ;;  %515 = vmatprep.subr.bf16.mxu1 %v585_v0  ;;  %v572_v10 = vld [vmem:[%s757_s5 + $0x20] sm:$0xff]   ;;  %v567_v11 = vld [vmem:[%s756_s3 + $0x8] sm:$0xff]   ;;  %v573_v12 = vld [vmem:[%s757_s5 + $0x18] sm:$0xff]   ;;  %v268_v41 = vmul.u32 2, %v267_v40 }
   0x5   :  { %v568_v13 = vld [vmem:[%s756_s3] sm:$0xff]   ;;  %v574_v15 = vld [vmem:[%s757_s5 + $0x10] sm:$0xff]   ;;  %v575_v16 = vld [vmem:[%s757_s5 + $0x8] sm:$0xff]  }
   0x6   :  { %v30_v14 = vld [vmem:[%s758_s0] sm:$0xf]  ;;  %v577_v32 = vld [vmem:[%s759_s7 + $0x38] sm:$0xff]   ;;  %v578_v34 = vld [vmem:[%s759_s7 + $0x30] sm:$0xff]   ;;  %v270_v43 = vadd.s32 2, %v268_v41  ;;  %vm269_vm2 = vcmp.ge.s32.totalorder %v263_v42, %v268_v41 }
   0x7   :  { %496 = vmatpush3.bf16.msra.mxu0 %v562_v2  ;;  %516 = vmatpush3.bf16.msra.mxu1 %v570_v6  ;;  %v576_v17 = vld [vmem:[%s757_s5] sm:$0xff]   ;;  %v144_v26 = vunpack.c.l.bf16 %v30_v14  ;;  %v579_v35 = vld [vmem:[%s759_s7 + $0x28] sm:$0xff]   ;;  %v581_v37 = vld [vmem:[%s759_s7 + $0x18] sm:$0xff]  }
   0x8   :  { %497 = vmatprep.subr.bf16.mxu0 %v585_v0  ;;  %517 = vmatprep.subr.bf16.mxu1 %v585_v0  ;;  %v276_v18 = vld [vmem:[%s760_s2] sm:$0xf]  ;;  %v582_v38 = vld [vmem:[%s759_s7 + $0x10] sm:$0xff]   ;;  %vm271_vm3 = vcmp.lt.s32.totalorder %v263_v42, %v270_v43  ;;  %v583_v44 = vld [vmem:[%s759_s7 + $0x8] sm:$0xff]  }
   0x9   :  { %v283_v19 = vsel %vm281_vm1, %v276_v18, 0  ;;  %v31_v20 = vld [vmem:[%s761_s1] sm:$0xf]  ;;  %vm272_vm4 = vmand %vm269_vm2, %vm271_vm3 }
   0xa   :  { %v436_v21 = vld [vmem:[%s762_s4] ss:$0 sm:$0xff]  ;;  %v145_v24 = vunpack.c.l.bf16 %v31_v20  ;;  %v454_v45 = vsel %vm272_vm4, 1.0, %v585_v0 }
   0xb   :  { %498 = vmatpush3.bf16.msra.mxu0 %v563_v3  ;;  %518 = vmatpush3.bf16.msra.mxu1 %v571_v8  ;;  %v580_v36 = vld [vmem:[%s759_s7 + $0x20] sm:$0xff]   ;;  %v275_v46 = vpack.c.bf16 %v454_v45, %v454_v45 }
   0xc   :  { %499 = vmatprep.subr.bf16.mxu0 %v585_v0  ;;  %519 = vmatprep.subr.bf16.mxu1 %v585_v0  ;;  %v584_v47 = vld [vmem:[%s759_s7] sm:$0xff]  }
   0xd   :  { %v445_v48 = vld [vmem:[%s763_s6] ss:$0 sm:$0xff] }
   0xf   :  { %500 = vmatpush3.bf16.msra.mxu0 %v564_v5  ;;  %520 = vmatpush3.bf16.msra.mxu1 %v572_v10 }
  0x10   :  { %501 = vmatprep.subr.bf16.mxu0 %v585_v0  ;;  %521 = vmatprep.subr.bf16.mxu1 %v585_v0 }
  0x13   :  { %502 = vmatpush3.bf16.msra.mxu0 %v565_v7  ;;  %522 = vmatpush3.bf16.msra.mxu1 %v573_v12 }
  0x14   :  { %503 = vmatprep.subr.bf16.mxu0 %v585_v0  ;;  %523 = vmatprep.subr.bf16.mxu1 %v585_v0 }
  0x17   :  { %504 = vmatpush3.bf16.msra.mxu0 %v566_v9  ;;  %524 = vmatpush3.bf16.msra.mxu1 %v574_v15 }
  0x18   :  { %505 = vmatprep.subr.bf16.mxu0 %v585_v0  ;;  %525 = vmatprep.subr.bf16.mxu1 %v585_v0 }
  0x1b   :  { %506 = vmatpush3.bf16.msra.mxu0 %v567_v11  ;;  %526 = vmatpush3.bf16.msra.mxu1 %v575_v16 }
  0x1c   :  { %507 = vmatprep.subr.bf16.mxu0 %v585_v0  ;;  %527 = vmatprep.subr.bf16.mxu1 %v585_v0 }
  0x1f   :  { %508 = vmatpush3.bf16.msra.mxu0 %v568_v13  ;;  %528 = vmatpush3.bf16.msra.mxu1 %v576_v17 }
  0x20   :  { %533 = vmatprep.subr.bf16.mxu0 %v585_v0  ;;  %539 = vmatprep.subr.bf16.mxu1 %v585_v0 }
  0x22   :  { %510 = vmatmul.mubr.bf16.vlgmr.msra.gmra.mxu0 %v30_v14 }
  0x23   :  { %535 = vmatprep.mubr.msk.bf16.mxu0 %vm586_vm0, %v585_v0  ;;  %534 = vmatpush3.bf16.msra.mxu0 %v283_v19 }
  0x2a   :  { %536 = vmatmul.mubr.msk.bf16.vlgmr.msra.gmra.mxu0 %vm277_vm5, %v275_v46 }
  0xe2   :  { %v137_v22 = vpop.f32.mrf.mxu0 }
  0xe3   :  { %v138_v23 = vadd.f32 %v436_v21, %v137_v22 }
  0xe4   :  { %v511_v25 = vpop.f32.mrf.mxu0 }
  0xe5   :  { %v143_v27 = vmax.f32 %v138_v23, 0.0 }
  0xe6   :  { %v140_v28 = vpop.f32.mrf.mxu0 }
  0xe7   :  { %v146_v29 = vmul.f32 %v145_v24, %v143_v27 }
  0xe8   :  { %v512_v30 = vpop.f32.mrf.mxu0 }
  0xe9   :  { %v147_v31 = vadd.f32 %v146_v29, %v144_v26 }
  0xea   :  { %v319_v56 = vpop.f32.mrf.mxu0 }
  0xeb   :  { %v148_v33 = vpack.c.bf16 %v147_v31, %v147_v31 }
  0xec   :  { %v537_v57 = vpop.f32.mrf.mxu0 }
  0xed   :  { %530 = vmatmul.mubr.bf16.vlgmr.msra.gmra.mxu1 %v148_v33 }
  0xee   :  { %540 = vmatpush3.bf16.msra.mxu1 %v577_v32  ;;  %555 = vmatprep.mubr.msk.bf16.mxu1 %vm586_vm0, %v585_v0  ;;  %v322_v58 = vpop.f32.mrf.mxu0 }
  0xef   :  { %541 = vmatprep.subr.bf16.mxu1 %v585_v0 }
  0xf0   :  { %v538_v59 = vpop.f32.mrf.mxu0 }
  0xf2   :  { %542 = vmatpush3.bf16.msra.mxu1 %v578_v34 }
  0xf3   :  { %543 = vmatprep.subr.bf16.mxu1 %v585_v0 }
  0xf6   :  { %544 = vmatpush3.bf16.msra.mxu1 %v579_v35 }
  0xf7   :  { %545 = vmatprep.subr.bf16.mxu1 %v585_v0 }
  0xfa   :  { %546 = vmatpush3.bf16.msra.mxu1 %v580_v36 }
  0xfb   :  { %547 = vmatprep.subr.bf16.mxu1 %v585_v0 }
  0xfe   :  { %548 = vmatpush3.bf16.msra.mxu1 %v581_v37 }
  0xff   :  { %549 = vmatprep.subr.bf16.mxu1 %v585_v0 }
 0x102   :  { %550 = vmatpush3.bf16.msra.mxu1 %v582_v38 }
 0x103   :  { %551 = vmatprep.subr.bf16.mxu1 %v585_v0 }
 0x106   :  { %552 = vmatpush3.bf16.msra.mxu1 %v583_v44 }
 0x107   :  { %553 = vmatprep.subr.bf16.mxu1 %v585_v0 }
 0x10a   :  { %554 = vmatpush3.bf16.msra.mxu1 %v584_v47 }
 0x1ad   :  { %v254_v49 = vpop.f32.mrf.mxu1 }
 0x1ae   :  { %v255_v50 = vadd.f32 %v445_v48, %v254_v49 }
 0x1af   :  { %v531_v51 = vpop.f32.mrf.mxu1 }
 0x1b0   :  { %v260_v52 = vmax.f32 %v255_v50, 0.0 }
 0x1b1   :  { %v257_v53 = vpop.f32.mrf.mxu1 }
 0x1b2   :  { %v325_v54 = vpack.c.bf16 %v260_v52, %v260_v52 }
 0x1b3   :  { %v532_v55 = vpop.f32.mrf.mxu1 }
 0x1b4   :  { %556 = vmatmul.mubr.bf16.vlgmr.msra.gmra.mxu1 %v325_v54 }
 0x274   :  { %v424_v60 = vpop.f32.mrf.mxu1 }
 0x275   :  { %v425_v61 = vadd.f32 %v424_v60, %v319_v56 }
 0x276   :  { %v557_v62 = vpop.f32.mrf.mxu1 }
 0x277   :  { %v430_v63 = vmax.f32 %v425_v61, 0.0 }
 0x278   :  { %v427_v0 = vpop.f32.mrf.mxu1 }
 0x279   :  { %431 = vst [vmem:[%s764_s8] sm:$0xff] %v430_v63 }
 0x27a   :  { %v558_v1 = vpop.f32.mrf.mxu1 }

</bundles_post_ra>
